<compile_context>
chip_gen: v5e
topology: v5e:2x2
jax: 0.10.0
libtpu: 0.0.40
codegen_flags: <defaults>
</compile_context>

<pallas_src>
import functools

import jax
import jax.numpy as jnp
from jax.experimental import pallas as pl
from jax.experimental.pallas import tpu as pltpu

config = {"num_joints": 4, "tag_loss_weight": 1.0}


# ----------------------------------------------------------------------------
# Kernel 1: heatmap MSE  (mean over dim3 -> dim2 -> dim1 == mean over C,H,W)
# ----------------------------------------------------------------------------
def _heatmap_mse_kernel(pred_ref, true_ref, mask_ref, out_ref, *, inv_count):
    s = pl.program_id(1)

    @pl.when(s == 0)
    def _():
        out_ref[...] = jnp.zeros_like(out_ref)

    pred = pred_ref[0].astype(jnp.float32)          # (C, TS)
    true = true_ref[0].astype(jnp.float32)          # (C, TS)
    mask = mask_ref[0].astype(jnp.float32)          # (1, TS)

    diff = pred - true
    # reduce over channels first, then one mask multiply (saves (C-1)*TS muls)
    per_pix = jnp.sum(diff * diff, axis=0, keepdims=True)     # (1, TS)
    partial = jnp.sum(per_pix * mask) * inv_count              # scalar
    out_ref[...] += jnp.broadcast_to(partial, out_ref.shape)


def _choose_spatial_tile(s, cap=16384):
    """Largest spatial tile (multiple of 128, divides s) up to `cap`."""
    if s <= cap:
        return s
    ts = cap - (cap % 128)
    while ts >= 128:
        if s % ts == 0:
            return ts
        ts -= 128
    return s  # fallback: whole spatial extent


def heatmap_mse(y_pred, y_true, mask):
    B, C, H, W = y_pred.shape
    S = H * W
    TS = _choose_spatial_tile(S)
    n_t = S // TS

    pred = y_pred.reshape(B, C, S)          # lane-dense: H*W on the lane axis
    true = y_true.reshape(B, C, S)
    msk = mask.reshape(B, 1, S)

    kernel = functools.partial(_heatmap_mse_kernel,
                               inv_count=1.0 / float(C * H * W))
    out = pl.pallas_call(
        kernel,
        out_shape=jax.ShapeDtypeStruct((B, 1, 128), jnp.float32),
        grid=(B, n_t),
        in_specs=[
            pl.BlockSpec((1, C, TS), lambda b, s: (b, 0, s)),
            pl.BlockSpec((1, C, TS), lambda b, s: (b, 0, s)),
            pl.BlockSpec((1, 1, TS), lambda b, s: (b, 0, s)),
        ],
        out_specs=pl.BlockSpec((1, 1, 128), lambda b, s: (b, 0, 0)),
        compiler_params=pltpu.CompilerParams(
            dimension_semantics=("parallel", "arbitrary")),
    )(pred, true, msk)
    return out[:, 0, 0]                      # (B,)


# ----------------------------------------------------------------------------
# Kernel 2: associative-embedding tag loss (pull + push), all batches at once.
# ----------------------------------------------------------------------------
def _tag_loss_kernel(tpj_ref, vpj_ref, tjp_ref, vjp_ref, out_ref):
    f32 = jnp.float32
    tpj = tpj_ref[...].astype(f32)          # (B, P, J)  gathered tags
    vpj = vpj_ref[...].astype(f32)          # (B, P, J)  visibility
    tjp = tjp_ref[...].astype(f32)          # (B, J, P)  gathered tags (T)
    vjp = vjp_ref[...].astype(f32)          # (B, J, P)  visibility (T)

    # column-oriented per-person stats (person axis on sublanes)
    tags_c = tpj * vpj
    pjc_c = jnp.sum(vpj, axis=2, keepdims=True)                  # (B, P, 1)
    valid_c = (pjc_c > 0.0).astype(f32)                          # (B, P, 1)
    pjc_c_safe = jnp.where(pjc_c == 0.0, 1.0, pjc_c)
    mean_c = jnp.sum(tags_c, axis=2, keepdims=True) / pjc_c_safe  # (B, P, 1)

    # row-oriented per-person stats (person axis on lanes) — pure VPU, no MXU
    tags_r = tjp * vjp
    pjc_r = jnp.sum(vjp, axis=1, keepdims=True)                  # (B, 1, P)
    valid_r = (pjc_r > 0.0).astype(f32)                          # (B, 1, P)
    pjc_r_safe = jnp.where(pjc_r == 0.0, 1.0, pjc_r)
    mean_r = jnp.sum(tags_r, axis=1, keepdims=True) / pjc_r_safe  # (B, 1, P)

    person_cnt = jnp.sum(valid_c, axis=1, keepdims=True)         # (B, 1, 1)
    pc_safe = jnp.where(person_cnt == 0.0, 1.0, person_cnt)      # (B, 1, 1)

    # pull
    pull_p = jnp.sum(vpj * (tags_c - mean_c) ** 2, axis=2,
                     keepdims=True) / pjc_c_safe                 # (B, P, 1)
    pull_b = jnp.sum(pull_p, axis=1, keepdims=True) / pc_safe    # (B, 1, 1)

    # push: (B, P, P) via broadcast subtraction/multiply (VPU only)
    vm = valid_c * valid_r                                       # (B, P, P)
    d = (mean_c - mean_r) * vm
    d = jnp.exp(-(d * d)) * vm
    d_sum = jnp.sum(jnp.sum(d, axis=2, keepdims=True), axis=1,
                    keepdims=True)                               # (B, 1, 1)
    denom = jnp.maximum((pc_safe - 1.0) * pc_safe, 1.0)
    push_b = 0.5 * (d_sum - pc_safe) / denom
    push_b = jnp.where(pc_safe < 2.0, 0.0, push_b)               # (B, 1, 1)

    out_ref[...] = jnp.broadcast_to(pull_b + push_b,
                                    out_ref.shape).astype(out_ref.dtype)


def tag_loss_per_sample(tags_pred, joints):
    # tags_pred: (B, Ct, H, W); joints: (B, P, J, 2) int
    B = tags_pred.shape[0]
    P, J = joints.shape[1], joints.shape[2]
    flat = tags_pred.reshape(B, -1)                              # (B, L)

    loc = joints[..., 0].astype(jnp.int32).reshape(B, P * J)
    vis = joints[..., 1].astype(jnp.float32)                     # (B, P, J)

    # gather in the wrapper (XLA gather); kernel work is then O(P*J) only.
    gathered = jnp.take_along_axis(flat, loc, axis=1)
    tpj = gathered.reshape(B, P, J).astype(jnp.float32)
    vpj = vis
    tjp = jnp.transpose(tpj, (0, 2, 1))                          # (B, J, P)
    vjp = jnp.transpose(vpj, (0, 2, 1))                          # (B, J, P)

    out = pl.pallas_call(
        _tag_loss_kernel,
        out_shape=jax.ShapeDtypeStruct((B, 1, 128), jnp.float32),
        grid=(1,),
        in_specs=[
            pl.BlockSpec((B, P, J), lambda i: (0, 0, 0)),
            pl.BlockSpec((B, P, J), lambda i: (0, 0, 0)),
            pl.BlockSpec((B, J, P), lambda i: (0, 0, 0)),
            pl.BlockSpec((B, J, P), lambda i: (0, 0, 0)),
        ],
        out_specs=pl.BlockSpec((B, 1, 128), lambda i: (0, 0, 0)),
        compiler_params=pltpu.CompilerParams(
            dimension_semantics=("arbitrary",)),
    )(tpj, vpj, tjp, vjp)
    return out[:, 0, 0]                      # (B,) per-batch (pull_b + push_b)


# ----------------------------------------------------------------------------
# Lp_Loss.forward
# ----------------------------------------------------------------------------
def lp_loss_forward(y_preds, gtHeatmaps, gtMask, gtJoints):
    nj = config["num_joints"]
    w = config["tag_loss_weight"]
    heatmaps_losses, tag_losses = [], []
    for idx in range(len(y_preds)):
        yp = y_preds[idx]
        heatmaps_losses.append(heatmap_mse(yp[:, :nj], gtHeatmaps[idx],
                                           gtMask[idx]))
        per_b = tag_loss_per_sample(yp[:, nj:], gtJoints[idx])   # (B,)
        # torch.mean(pull) + torch.mean(push) == mean over batch of per-b sums
        tag_losses.append(jnp.mean(per_b) * w)
    return heatmaps_losses, tag_losses


# ----------------------------------------------------------------------------
# Pure-JAX reference (mirrors the PyTorch code) for a sanity check.
# ----------------------------------------------------------------------------
def _ref_heatmap_mse(y_pred, y_true, mask):
    loss = (y_pred - y_true) ** 2 * mask[:, None, :, :]
    return loss.mean(axis=(1, 2, 3))


def _ref_tag_loss(tag_map, joints):
    B, P, J = joints.shape[0], joints.shape[1], joints.shape[2]
    vis = joints[..., 1].astype(jnp.float32)
    loc = joints[..., 0].astype(jnp.int32)
    pjc = vis.sum(axis=2, keepdims=True)
    tags = jnp.take_along_axis(tag_map, loc.reshape(B, -1),
                               axis=1).reshape(B, P, J) * vis
    person_cnt = (pjc > 0).astype(jnp.float32).squeeze(2).sum(axis=1,
                                                              keepdims=True)
    person_cnt = jnp.where(person_cnt == 0, 1.0, person_cnt)
    valid = (pjc > 0).astype(jnp.float32)
    person_vis = valid * jnp.transpose(valid, (0, 2, 1))
    pjc_safe = jnp.where(pjc == 0, 1.0, pjc)
    tags_mean = tags.sum(axis=2, keepdims=True) / pjc_safe
    pull = jnp.sum(vis * (tags - tags_mean) ** 2, axis=2,
                   keepdims=True) / pjc_safe
    pull = pull.squeeze(2).sum(axis=1, keepdims=True) / person_cnt
    pull = jnp.mean(pull)
    tm = jnp.broadcast_to(tags_mean, (B, P, P))
    diff = (tm - jnp.transpose(tm, (0, 2, 1))) * person_vis
    diff = jnp.exp(-diff ** 2) * person_vis
    denom = jnp.maximum((person_cnt - 1) * person_cnt, 1.0).squeeze(1)
    diff = 0.5 * (jnp.sum(diff, axis=(1, 2)) - person_cnt.squeeze(1)) / denom
    diff = jnp.where(person_cnt.squeeze(1) < 2, 0.0, diff)
    push = jnp.mean(diff)
    return push + pull


if __name__ == "__main__":
    key = jax.random.PRNGKey(0)
    B, NJ, TAGC, P, J = 2, config["num_joints"], 4, 6, 4
    sizes = [(16, 16), (32, 32)]

    y_preds, gtHeatmaps, gtMask, gtJoints = [], [], [], []
    for (H, W) in sizes:
        key, k1, k2, k3, k4, k5 = jax.random.split(key, 6)
        y_preds.append(jax.random.normal(k1, (B, NJ + TAGC, H, W), jnp.float32))
        gtHeatmaps.append(jax.random.uniform(k2, (B, NJ, H, W), jnp.float32))
        gtMask.append((jax.random.uniform(k3, (B, H, W)) > 0.3)
                      .astype(jnp.float32))
        L = TAGC * H * W
        loc = jax.random.randint(k4, (B, P, J), 0, L)
        vis = jax.random.bernoulli(k5, 0.7, (B, P, J)).astype(jnp.int32)
        gtJoints.append(jnp.stack([loc, vis], axis=-1).astype(jnp.int32))

    heat_losses, tag_losses = lp_loss_forward(y_preds, gtHeatmaps, gtMask,
                                              gtJoints)
    jax.block_until_ready(heat_losses)
    jax.block_until_ready(tag_losses)

    # sanity check against the pure-JAX reference of the PyTorch module
    for idx in range(len(y_preds)):
        ref_h = _ref_heatmap_mse(y_preds[idx][:, :NJ], gtHeatmaps[idx],
                                 gtMask[idx])
        assert jnp.allclose(heat_losses[idx], ref_h, rtol=2e-3, atol=1e-5), (
            heat_losses[idx], ref_h)
        tp = y_preds[idx][:, NJ:].reshape(B, -1)
        ref_t = _ref_tag_loss(tp, gtJoints[idx]) * config["tag_loss_weight"]
        assert jnp.allclose(tag_losses[idx], ref_t, rtol=2e-3, atol=1e-5), (
            tag_losses[idx], ref_t)

    print("KERNEL_OK")
</pallas_src>

<mosaic_0001>
module attributes {stable_mosaic.version = 11 : i64} {
  func.func @_heatmap_mse_kernel(%arg0: i32, %arg1: i32, %arg2: memref<1x4x256xf32, #tpu.memory_space<vmem>>, %arg3: memref<1x4x256xf32, #tpu.memory_space<vmem>>, %arg4: memref<1x1x256xf32, #tpu.memory_space<vmem>>, %arg5: memref<1x1x128xf32, #tpu.memory_space<vmem>>) attributes {dimension_semantics = [#tpu.dimension_semantics<parallel>, #tpu.dimension_semantics<arbitrary>], iteration_bounds = array<i64: 2, 1>, scalar_prefetch = 0 : i64, scratch_operands = 0 : i64, tpu.core_type = #tpu.core_type<tc>, window_params = [{transform_indices = @transform_0, window_bounds = array<i64: 1, 4, 256>}, {transform_indices = @transform_1, window_bounds = array<i64: 1, 4, 256>}, {transform_indices = @transform_2, window_bounds = array<i64: 1, 1, 256>}, {transform_indices = @transform_3, window_bounds = array<i64: 1, 1, 128>}]} {
    %c0_i32 = arith.constant 0 : i32
    %0 = arith.cmpi eq, %arg1, %c0_i32 : i32
    %1 = arith.extui %0 : i1 to i32
    %c0_i32_0 = arith.constant 0 : i32
    %2 = arith.cmpi ne, %1, %c0_i32_0 : i32
    scf.if %2 {
      %cst_17 = arith.constant 0.000000e+00 : f32
      %23 = vector.broadcast %cst_17 : f32 to vector<1x1x128xf32>
      %c0_18 = arith.constant 0 : index
      %c0_19 = arith.constant 0 : index
      %c0_20 = arith.constant 0 : index
      %24 = vector.load %arg5[%c0_18, %c0_19, %c0_20] : memref<1x1x128xf32, #tpu.memory_space<vmem>>, vector<1x1x128xf32>
      tpu.vector_store %arg5[%c0_18, %c0_19, %c0_20], %23 {strides = array<i32>} : memref<1x1x128xf32, #tpu.memory_space<vmem>>, vector<1x1x128xf32>,
    } else {
    }
    %c0 = arith.constant 0 : index
    %c0_1 = arith.constant 0 : index
    %c0_2 = arith.constant 0 : index
    %3 = vector.load %arg2[%c0, %c0_1, %c0_2] : memref<1x4x256xf32, #tpu.memory_space<vmem>>, vector<1x4x256xf32>
    %4 = vector.shape_cast %3 : vector<1x4x256xf32> to vector<4x256xf32>
    %c0_3 = arith.constant 0 : index
    %c0_4 = arith.constant 0 : index
    %c0_5 = arith.constant 0 : index
    %5 = vector.load %arg3[%c0_3, %c0_4, %c0_5] : memref<1x4x256xf32, #tpu.memory_space<vmem>>, vector<1x4x256xf32>
    %6 = vector.shape_cast %5 : vector<1x4x256xf32> to vector<4x256xf32>
    %c0_6 = arith.constant 0 : index
    %c0_7 = arith.constant 0 : index
    %c0_8 = arith.constant 0 : index
    %7 = vector.load %arg4[%c0_6, %c0_7, %c0_8] : memref<1x1x256xf32, #tpu.memory_space<vmem>>, vector<1x1x256xf32>
    %8 = vector.shape_cast %7 : vector<1x1x256xf32> to vector<1x256xf32>
    %9 = arith.subf %4, %6 : vector<4x256xf32>
    %10 = arith.mulf %9, %9 : vector<4x256xf32>
    %cst = arith.constant dense<0.000000e+00> : vector<256xf32>
    %11 = vector.multi_reduction <add>, %10, %cst [0] : vector<4x256xf32> to vector<256xf32>
    %12 = vector.shape_cast %11 : vector<256xf32> to vector<1x256xf32>
    %13 = arith.mulf %12, %8 : vector<1x256xf32>
    %14 = vector.shape_cast %13 : vector<1x256xf32> to vector<1x1x256xf32>
    %cst_9 = arith.constant dense<0.000000e+00> : vector<1xf32>
    %15 = vector.multi_reduction <add>, %14, %cst_9 [1, 2] : vector<1x1x256xf32> to vector<1xf32>
    %16 = vector.shape_cast %15 : vector<1xf32> to vector<1x1x1xf32>
    %17 = vector.extract %16[0, 0, 0] : f32 from vector<1x1x1xf32>
    %cst_10 = arith.constant 9.765625E-4 : f32
    %18 = arith.mulf %17, %cst_10 : f32
    %c0_11 = arith.constant 0 : index
    %c0_12 = arith.constant 0 : index
    %c0_13 = arith.constant 0 : index
    %19 = vector.load %arg5[%c0_11, %c0_12, %c0_13] : memref<1x1x128xf32, #tpu.memory_space<vmem>>, vector<1x1x128xf32>
    %20 = vector.broadcast %18 : f32 to vector<1x1x128xf32>
    %21 = arith.addf %19, %20 : vector<1x1x128xf32>
    %c0_14 = arith.constant 0 : index
    %c0_15 = arith.constant 0 : index
    %c0_16 = arith.constant 0 : index
    %22 = vector.load %arg5[%c0_14, %c0_15, %c0_16] : memref<1x1x128xf32, #tpu.memory_space<vmem>>, vector<1x1x128xf32>
    tpu.vector_store %arg5[%c0_14, %c0_15, %c0_16], %21 {strides = array<i32>} : memref<1x1x128xf32, #tpu.memory_space<vmem>>, vector<1x1x128xf32>,
    return
  }
  func.func @transform_0(%arg0: i32, %arg1: i32) -> (i32, i32, i32) {
    %c0_i32 = arith.constant 0 : i32
    %c0_i32_0 = arith.constant 0 : i32
    return %arg0, %c0_i32, %arg1 : i32, i32, i32
  }
  func.func @transform_1(%arg0: i32, %arg1: i32) -> (i32, i32, i32) {
    %c0_i32 = arith.constant 0 : i32
    %c0_i32_0 = arith.constant 0 : i32
    return %arg0, %c0_i32, %arg1 : i32, i32, i32
  }
  func.func @transform_2(%arg0: i32, %arg1: i32) -> (i32, i32, i32) {
    %c0_i32 = arith.constant 0 : i32
    %c0_i32_0 = arith.constant 0 : i32
    return %arg0, %c0_i32, %arg1 : i32, i32, i32
  }
  func.func @transform_3(%arg0: i32, %arg1: i32) -> (i32, i32, i32) {
    %c0_i32 = arith.constant 0 : i32
    %c0_i32_0 = arith.constant 0 : i32
    %c0_i32_1 = arith.constant 0 : i32
    return %arg0, %c0_i32, %c0_i32_0 : i32, i32, i32
  }
}

</mosaic_0001>

<bundles_post_ra>
// kernel: tpu_custom_call.1
= control target key start
LH: loop header
LB: loop body
LE: loop exit
PB: predicated region body
PF: predicated region fallthrough
CT: control target
= control target key end

     0   :  { %s934_s0 = inlined_call_operand.hbm [shape: f32[2,4,256], index: 0, kind: input, shape index: {}]   ;;  %s935_s1 = inlined_call_operand.hbm [shape: f32[2,4,256], index: 1, kind: input, shape index: {}]   ;;  %s936_s2 = inlined_call_operand.hbm [shape: f32[2,1,256], index: 2, kind: input, shape index: {}]   ;;  %s937_s3 = inlined_call_operand.hbm [shape: f32[2,1,128], index: 3, kind: output, shape index: {}]  }
   0x1   :  { %943 = sst [smem:[#allocation17_spill]] %s935_s1 }
   0x2   :  { %8 = vsyncpa [#allocation3], 0 }
   0x3   :  { %10 = vsyncpa [#allocation3 + $0x1], 0 }
   0x4   :  { %11 = vsyncpa [#allocation6], 0 }
   0x5   :  { %13 = vsyncpa [#allocation6 + $0x1], 0 }
   0x6   :  { %14 = vsyncpa [#allocation4], 0 }
   0x7   :  { %16 = vsyncpa [#allocation4 + $0x1], 0  ;;  %s779_s12 = smov 0   ;;  %s781_s13 = smov 0  }
   0x8   :  { %s783_s14 = smov 0   ;;  %s785_s15 = smov 0  }
   0x9   :  { %s787_s16 = smov 0   ;;  %s789_s17 = smov 0  }
   0xa LB: > { %944 = sst [smem:[#allocation12_spill]] %s744_s14  ;;  %s810_s18 = sadd.s32 4294967295, %s756_s17   ;;  %s756_s17 = sphi %s789_s17, %s22_s17   ;;  %s752_s16 = sphi %s787_s16, %s964_s16   ;;  %s748_s15 = sphi %s785_s15, %s963_s15   ;;  %s744_s14 = sphi %s783_s14, %s959_s14   ;;  %s740_s13 = sphi %s781_s13, %s962_s13   ;;  %s736_s12 = sphi %s779_s12, %s961_s12  }
   0xb   : > { %945 = sst [smem:[#allocation13_spill]] %s756_s17  ;;  %s486_s19 = sadd.s32 4294967294, %s756_s17  }
   0xc   : > { %s34_s20 = sadd.s32 1, %s752_s16  ;;  %s43_s21 = sadd.s32 1, %s744_s14 }
   0xd   : > { %p36_p0 = scmp.ge.s32.totalorder %s34_s20, 2  ;;  %p50_p1 = scmp.ne.s32.totalorder %s744_s14, %s740_s13 }
   0xe   : > { %p51_p2 = scmp.eq.s32.totalorder %s756_s17, 0  ;;  %p56_p3 = scmp.ne.s32.totalorder %s740_s13, %s736_s12 }
   0xf   : > { %s966_s20 = smov (%p36_p0, %s34_s20), 0  ;;  %p57_p5 = scmp.eq.s32.totalorder %s810_s18, 0 }
  0x10   : > { %946 = sst [smem:[#allocation14_spill]] %s966_s20  ;;  %p822_p4 = por %p51_p2, %p50_p1 }
  0x11   : > { %s38_s23 = ssub.s32 %s752_s16, %s966_s20  ;;  %p136_p6 = scmp.eq.s32.totalorder %s810_s18, 1 }
  0x12   : > { %p41_p7 = scmp.eq.s32.totalorder %s38_s23, 0  ;;  %p830_p8 = por %p57_p5, %p56_p3 }
  0x13   : > { %p834_p9 = por %p136_p6, %p50_p1  ;;  %p142_p10 = scmp.eq.s32.totalorder %s486_s19, 1 }
  0x14   : > { %s839_s26 = scalar_select %p41_p7, %s744_s14, %s43_s21  }
  0x15   : > { %p841_p11 = por %p142_p10, %p56_p3  ;;  %p488_p12 = scmp.ge.s32.totalorder %s756_s17, 2 }
  0x16   : > { %950 = sst [smem:[#allocation15_spill]] %s839_s26  ;;  %p529_p13 = scmp.lt.s32.totalorder %s756_s17, 2 }
  0x17   : > { %s951_s27 = scalar_select %p841_p11, 1, 0 }
  0x18   : > { %s162_s28 = sand.u32 1, %s744_s14   ;;  %s503_s30 = sshll.u32 %s752_s16, 3 }
  0x19   : > { %952 = sst [smem:[#allocation16_spill]] %s951_s27  ;;  %s489_s29 = sshll.u32 %s162_s28, 3 }
  0x1a   : > { %p851_p0 = pnand %p529_p13, %p822_p4  ;;  %s184_s5 = sand.u32 1, %s756_s17  }
  0x1b   : > { %s954_s1 = sld [smem:[#allocation17_spill]]  ;;  %s188_s10 = scalar_lea.vmem [#allocation5], %s489_s29 }
  0x1c   : > { %s199_s11 = sshll.u32 %s188_s10, 4  ;;  %s185_s19 = scalar_lea.sflag [#allocation6], %s184_s5  ;;  %s200_s11 = int_to_ptr.vmem [resolvable:$true] %s199_s11 }
  0x1d   : > { %p497_p1 = scmp.ge.s32.totalorder %s756_s17, 1  ;;  %p225_p2 = scmp.lt.s32.totalorder %s756_s17, 3 }
  0x1e   : > { %s173_s6 = scalar_lea.hbm %s934_s0, %s503_s30  ;;  %s495_s5 = sshll.u32 %s162_s28, 1 }
  0x1f   : > { %p863_p3 = pnand %p497_p1, %p225_p2  ;;  %s175_s7 = sshll.u32 %s173_s6, 4  ;;  %s176_s7 = int_to_ptr.hbm [resolvable:$true] %s175_s7 }
  0x20   : > { %s210_s17 = scalar_lea.vmem [#allocation7], %s495_s5 }
  0x21   : > { %s195_s8 = scalar_lea.hbm %s954_s1, %s503_s30  ;;  %s163_s1 = scalar_lea.sflag [#allocation3], %s162_s28 }
  0x22   : > { %s197_s9 = sshll.u32 %s195_s8, 4  ;;  %s166_s8 = scalar_lea.vmem [#allocation2], %s489_s29  ;;  %s198_s9 = int_to_ptr.hbm [resolvable:$true] %s197_s9 }
  0x23   : > { %521 = dma.hbm_to_vmem [thread:$0]  (!%p851_p0), %s198_s9, 128, %s200_s11, %s185_s19  }
  0x24   : > { %s177_s10 = sshll.u32 %s166_s8, 4  ;;  %s496_s9 = sshll.u32 %s752_s16, 1  ;;  %s178_s10 = int_to_ptr.vmem [resolvable:$true] %s177_s10 }
  0x25   : > { %518 = dma.hbm_to_vmem [thread:$0]  (!%p851_p0), %s176_s7, 128, %s178_s10, %s163_s1  }
  0x26   : > { %s216_s26 = scalar_lea.hbm %s936_s2, %s496_s9  ;;  %s220_s27 = sshll.u32 %s210_s17, 4  ;;  %s221_s27 = int_to_ptr.vmem [resolvable:$true] %s220_s27 }
  0x27   : > { %s218_s14 = sshll.u32 %s216_s26, 4  ;;  %229 = sbr.rel (%p863_p3) target bundleno = 265 (0x109), region = 32  ;;  %s219_s14 = int_to_ptr.hbm [resolvable:$true] %s218_s14 }
  0x28   : > { %524 = dma.hbm_to_vmem [thread:$0]  (!%p851_p0), %s219_s14, 32, %s221_s27, %s185_s19  }
  0x29   : > { %s881_s29 = sand.u32 (!%p863_p3), 1, %s740_s13  }
  0x2a   : > { %s498_s1 = sshll.u32 (!%p863_p3), %s881_s29, 3  ;;  %s232_s28 = scalar_lea.sflag (!%p863_p3), [#allocation3], %s881_s29 }
  0x2b   : > { %s235_s20 = scalar_lea.vmem (!%p863_p3), [#allocation2], %s498_s1 }
  0x2c   : > { %723 = dma.done.wait (%p830_p8), %s232_s28, 128  }
  0x2d   : > { %725 = vsyncadd (%p830_p8), %s232_s28, 4294967168  ;;  %s241_s14 = sand.u32 1, %s810_s18   ;;  %s245_s26 = scalar_lea.vmem [#allocation5], %s498_s1 }
  0x2e   : > { %s242_s17 = scalar_lea.sflag [#allocation6], %s241_s14 }
  0x2f   : > { %727 = dma.done.wait (%p830_p8), %s242_s17, 160  }
  0x30   : > { %729 = vsyncadd (%p830_p8), %s242_s17, 4294967136  ;;  %v296_v0 = vld [vmem:[%s235_s20] sm:$0xff]  ;;  %v297_v1 = vld [vmem:[%s245_s26] sm:$0xff]  ;;  %vm307_vm0 = vcmask 1043456   ;;  %s500_s27 = sshll.u32 %s881_s29, 1  ;;  %vm329_vm1 = vcmask 1040384   ;;  %s356_s19 = scalar_lea.hbm %s937_s3, %s748_s15 }
  0x31   : > { %v299_v2 = vsub.f32 %v296_v0, %v297_v1  ;;  %s255_s18 = scalar_lea.vmem [#allocation7], %s500_s27  ;;  %s287_s24 = scalar_lea.vmem [#allocation8], %s881_s29  ;;  %v758_v28 = vmov 0.0  }
  0x32   : > { %v298_v14 = vld [vmem:[%s255_s18] sm:$0x3]  ;;  %295 = vst [vmem:[%s287_s24] sm:$0x1] %v758_v28  ;;  %s358_s22 = sshll.u32 %s287_s24, 4  ;;  %s360_s6 = sshll.u32 %s356_s19, 4  ;;  %s359_s22 = int_to_ptr.vmem [resolvable:$true] %s358_s22  ;;  %s361_s6 = int_to_ptr.hbm [resolvable:$true] %s360_s6 }
  0x33   : > { %v300_v3 = vmul.f32 %v299_v2, %v299_v2  ;;  %v323_v19 = vperm.slane %v298_v14, 0  ;;  %v324_v20 = vperm.slane %v298_v14, 1  ;;  %s348_s7 = scalar_lea.sflag [#allocation4], %s881_s29  ;;  %s684_s8 = sshra.s32 %s361_s6, 4  ;;  %s685_s8 = int_to_ptr.hbm [resolvable:$true] %s684_s8 }
  0x34   : > { %s686_s10 = scalar_lea.hbm %s685_s8, 1  ;;  %s690_s9 = scalar_lea.hbm %s937_s3, 2 }
  0x35   : > { %302 = vst [vmem:[#allocation1] ss:$2 sm:$0xff] %v300_v3  ;;  %p687_p4 = scmp.ne.s32.totalorder %s685_s8, %s686_s10  ;;  %p691_p7 = scmp.lt.s32.totalorder %s685_s8, %s937_s3 }
  0x36   : > { %p692_p8 = scmp.lt.s32.totalorder %s690_s9, %s686_s10 }
  0x37   : > { %p688_p5 = pnand %p687_p4, %p834_p9 }
  0x38   : > { %p693_p10 = por %p692_p8, %p691_p7 }
  0x39   : > { %v343_v36 = vld [vmem:[%s287_s24] sm:$0x1]  ;;  %p689_p6 = pneg %p688_p5 }
  0x3b   : > { %p694_p13 = pnand %p693_p10, %p689_p6 }
  0x3c   : > { %v303_v4 = vld.sshfl [vmem:[#allocation1] sm:$0xff pattern:$0x75316420]  ;;  %v304_v5 = vld.sshfl [vmem:[#allocation1 + $0x8] sm:$0xff pattern:$0x75316420] }
  0x3d   : > { %v308_v6 = vsel %vm307_vm0, %v303_v4, 0.0  ;;  %v315_v7 = vsel %vm307_vm0, %v304_v5, 0.0 }
  0x3e   : > { %v309_v8 = vrot.slane %v308_v6, 4  ;;  %v316_v9 = vrot.slane %v315_v7, 4 }
  0x40   : > { %v310_v10 = vadd.f32 %v309_v8, %v308_v6  ;;  %v317_v11 = vadd.f32 %v316_v9, %v315_v7 }
  0x42   : > { %v311_v12 = vrot.slane %v310_v10, 2  ;;  %v318_v13 = vrot.slane %v317_v11, 2 }
  0x44   : > { %v312_v15 = vadd.f32 %v311_v12, %v310_v10  ;;  %v319_v16 = vadd.f32 %v318_v13, %v317_v11 }
  0x46   : > { %v313_v17 = vrot.slane %v312_v15, 1  ;;  %v320_v18 = vrot.slane %v319_v16, 1 }
  0x48   : > { %v314_v21 = vadd.f32 %v313_v17, %v312_v15  ;;  %v321_v22 = vadd.f32 %v320_v18, %v319_v16 }
  0x4a   : > { %v327_v23 = vmul.f32 %v323_v19, %v314_v21  ;;  %v328_v24 = vmul.f32 %v324_v20, %v321_v22 }
  0x4c   : > { %v330_v25 = vsel %vm329_vm1, %v327_v23, 0.0  ;;  %v331_v26 = vsel %vm329_vm1, %v328_v24, 0.0 }
  0x4d   : > { %v332_v27 = vadd.f32 %v331_v26, %v330_v25 }
  0x4f   : > { %333 = vadd.xlane.f32.xlu0 %v332_v27 }
  0xc2   : > { %v334_v29 = vpop.xlane.xlu0 %333 }
  0xc3   : > { %v335_v30 = vrot.slane %v334_v29, 4 }
  0xc5   : > { %v336_v31 = vadd.f32 %v335_v30, %v334_v29 }
  0xc7   : > { %v337_v32 = vrot.slane %v336_v31, 2 }
  0xc9   : > { %v338_v33 = vadd.f32 %v337_v32, %v336_v31 }
  0xcb   : > { %v339_v34 = vrot.slane %v338_v33, 1 }
  0xcd   : > { %v340_v35 = vadd.f32 %v339_v34, %v338_v33 }
  0xcf   : > { %505 = vpush %v340_v35 }
 0x100   : > { %s506_s21 = spop %505 }
 0x101   : > { %s342_s23 = smul.f32 0.0009765625, %s506_s21 }
 0x103   : > { %v344_v37 = vstv %s342_s23 }
 0x104   : > { %v345_v38 = vadd.f32 %v344_v37, %v343_v36 }
 0x106   : > { %346 = vst [vmem:[%s287_s24] sm:$0x1] %v345_v38 }
 0x107   : > { %697 = shalt.err (!%p694_p13)
}
 0x108   : > { %513 = dma.vmem_to_hbm [thread:$0]  (%p834_p9), %s359_s22, 16, %s361_s6, %s348_s7  }
 0x109 PF: > { %s957_s28 = sld [smem:[#allocation13_spill]]  ;;  %s372_s20 = sand.u32 1, %s736_s12  }
 0x10a   : > { %p526_p0 = pnand %p488_p12, %p841_p11  ;;  %s373_s14 = scalar_lea.sflag [#allocation4], %s372_s20 }
 0x10c   : > { %p527_p1 = pneg %p526_p0 }
 0x10e   : > { %731 = dma.done.wait (%p527_p1), %s373_s14, 16  }
 0x10f   : > { %733 = vsyncadd (%p527_p1), %s373_s14, 4294967280  ;;  %s22_s17 = sadd.s32 1, %s957_s28   ;;  %s958_s26 = sld [smem:[#allocation12_spill]] }
 0x110   : > { %p19_p2 = scmp.ge.s32.totalorder %s22_s17, 4   ;;  %s959_s14 = sld [smem:[#allocation15_spill]] }
 0x111   : > { %s960_s25 = sld [smem:[#allocation14_spill]]  ;;  %s961_s12 = smov %s740_s13 }
 0x112   : > { %s963_s15 = smov %s752_s16 }
 0x113   :  { %21 = sbr.rel (!%p19_p2) target bundleno = 10 (0xa), region = 105 }
 0x115   : > { %s962_s13 = smov %s958_s26 }
 0x117   : > { %s964_s16 = smov %s960_s25 }
 0x118   :  { %378 = vsyncpa [#allocation3], 1 }
 0x119   :  { %380 = vsyncpa [#allocation3 + $0x1], 1 }
 0x11a   :  { %381 = vsyncpa [#allocation6], 1 }
 0x11b   :  { %383 = vsyncpa [#allocation6 + $0x1], 1 }
 0x11c   :  { %384 = vsyncpa [#allocation4], 1 }
 0x11d   :  { %386 = vsyncpa [#allocation4 + $0x1], 1 }

</bundles_post_ra>
